<compile_context>
chip_gen: v7x
topology: tpu7x:2x2x1
jax: 0.10.0
libtpu: 0.0.40
codegen_flags: <defaults>
</compile_context>

<pallas_src>
import jax
import jax.numpy as jnp
from jax.experimental import pallas as pl
from jax.experimental.pallas import tpu as pltpu


def _round_up(n, m):
    return ((n + m - 1) // m) * m


def _vmem_budget_bytes():
    """~75% of per-core VMEM: ~96 MiB on v5e/v6e, ~48 MiB on v7x."""
    cap = 64 * 1024 * 1024                      # conservative fallback (v7x)
    try:
        info = pltpu.get_tpu_info()
        cap = int(getattr(info, "vmem_capacity_bytes", cap))
    except Exception:
        pass
    return max((cap * 3) // 4, 16 * 1024 * 1024)


def _num_weight_planes(batch, weight_dtype):
    """3-mult complex planes only when VALU-bound (larger batch) and f32.

    At small batch the kernel is HBM-bound on the weight stream, so the 1.5x
    weight bytes of the 3-plane trick lose (esp. v5e); bf16 storage always
    ships raw (wr, wi) so the combined terms are formed in f32 in-kernel.
    """
    if jnp.dtype(weight_dtype) == jnp.dtype(jnp.float32) and batch > 8:
        return 3
    return 2


def _pick_mode_tile(m, cin, batch, cp, n_planes, w_bytes,
                    min_steps=4, max_tile=2048):
    """Mode-tile size from a VMEM budget plus a minimum-grid-length target."""
    m128 = _round_up(m, 128)
    budget = int(_vmem_budget_bytes() * 0.9)    # headroom for Mosaic scratch
    # double-buffered bytes per retained-mode column (x + w + out blocks)
    per_tm = 2 * (4 * 2 * cin * batch           # x block, f32 re+im
                  + w_bytes * n_planes * cin * cp   # weight block (dominant)
                  + 4 * 2 * batch * cp)         # out block, f32 re+im
    tm = (budget // max(per_tm, 1)) // 128 * 128
    tm = max(128, min(tm, max_tile))
    if m128 >= min_steps * 128:
        # keep >= min_steps grid steps: software pipelining + 2-TC sharding
        tm = min(tm, max(128, (m128 // min_steps) // 128 * 128))
    return min(tm, m128)


def _largest_dividing_tile(m_total, cap):
    t = min((cap // 128) * 128, m_total)
    while t > 128 and m_total % t != 0:
        t -= 128
    return max(t, 128)


def _make_spectral_kernel(batch, cin, n_planes, cp_sub=8, tm_sub=256):
    """out[b,o,m] = sum_i x[b,i,m] * w[i,o,m]  (complex), register-resident.

    Per grid step the kernel walks (batch, Cout-block, mode-subtile) output
    blocks; for each it runs the Cin contraction innermost, accumulating into a
    small (cp_sub, tm_sub) f32 block (a handful of vregs) and stores the block
    exactly once.
    """

    def kernel(idx_ref, x_ref, w_ref, o_ref):
        # idx_ref : SMEM (1,) int32  scalar-prefetch layer index (consumed by
        #           the weight index_map)
        # x_ref   : (2, batch*Cin, TM)          [0]=Re(x_ft), [1]=Im(x_ft)
        # w_ref   : (n_planes*Cin, CP, TM)      layer axis squeezed away
        # o_ref   : (2, batch, CP, TM)          [0]=Re(out),  [1]=Im(out)
        del idx_ref
        tm = x_ref.shape[-1]
        cp = o_ref.shape[2]
        tsub = tm_sub if tm % tm_sub == 0 else 128
        f32 = jnp.float32

        def cstep(b, co0, t0, i, acc_r, acc_i):
            lane = pl.ds(t0, tsub)
            sub = pl.ds(co0, cp_sub)
            xr = x_ref[0, pl.ds(b * cin + i, 1), lane]      # (1, tsub)
            xi = x_ref[1, pl.ds(b * cin + i, 1), lane]
            wr = w_ref[i, sub, lane]                        # (cp_sub, tsub)
            if wr.dtype != f32:
                wr = wr.astype(f32)
            if n_planes == 3:
                ws = w_ref[cin + i, sub, lane]              # wr + wi
                wd = w_ref[2 * cin + i, sub, lane]          # wi - wr
                if ws.dtype != f32:
                    ws = ws.astype(f32)
                    wd = wd.astype(f32)
                t = (xr + xi) * wr
                # (xr+i*xi)(wr+i*wi): Re = t - xi*(wr+wi), Im = t + xr*(wi-wr)
                return acc_r + (t - xi * ws), acc_i + (t + xr * wd)
            wim = w_ref[cin + i, sub, lane]
            if wim.dtype != f32:
                wim = wim.astype(f32)
            return (acc_r + (xr * wr - xi * wim),
                    acc_i + (xr * wim + xi * wr))

        for b in range(batch):
            for co in range(cp // cp_sub):
                co0 = co * cp_sub
                for ts in range(tm // tsub):
                    t0 = ts * tsub
                    acc_r = jnp.zeros((cp_sub, tsub), f32)
                    acc_i = jnp.zeros((cp_sub, tsub), f32)
                    if cin <= 8:
                        # small static Cin: full unroll, all-static indexing
                        for i in range(cin):
                            acc_r, acc_i = cstep(b, co0, t0, i, acc_r, acc_i)
                    else:
                        # production Cin: bounded live ranges, mild unroll so
                        # the ~12-16 live vregs per block never spill
                        acc_r, acc_i = jax.lax.fori_loop(
                            0, cin,
                            lambda i, c: cstep(b, co0, t0, i, c[0], c[1]),
                            (acc_r, acc_i), unroll=2)
                    o_ref[0, b, pl.ds(co0, cp_sub), pl.ds(t0, tsub)] = acc_r
                    o_ref[1, b, pl.ds(co0, cp_sub), pl.ds(t0, tsub)] = acc_i

    return kernel


def prepare_spectral_weights(w_real, w_imag, batch_size,
                             weight_dtype=jnp.float32):
    """One-time parameter-layout prep of the mother conv's weights.

    w_real/w_imag : (n_layers, Cin, Cout, 2*m1, m2h) float32
    returns       : (n_layers, n_planes*Cin, CP, M_total) in weight_dtype with
                    rows ordered [plane, cin]; planes are
                      f32 & batch>8 : [wr, wr+wi, wi-wr]  (3-mult product)
                      otherwise     : [wr, wi]            (4-mult product)
                    Cout padded to CP (multiple of 8), flattened retained-mode
                    axis padded to M_total (multiple of the kernel mode tile).
    """
    n_layers, cin, cout, twom1, m2h = w_real.shape
    m = twom1 * m2h
    cp = _round_up(max(cout, 8), 8)
    n_planes = _num_weight_planes(batch_size, weight_dtype)
    w_bytes = jnp.dtype(weight_dtype).itemsize
    tm = _pick_mode_tile(m, cin, batch_size, cp, n_planes, w_bytes)
    m_total = pl.cdiv(m, tm) * tm

    wr = w_real.reshape(n_layers, cin, cout, m).astype(jnp.float32)
    wi = w_imag.reshape(n_layers, cin, cout, m).astype(jnp.float32)
    if n_planes == 3:
        planes = jnp.stack([wr, wr + wi, wi - wr], axis=1)
    else:
        planes = jnp.stack([wr, wi], axis=1)            # raw planes for bf16
    planes = jnp.pad(
        planes, ((0, 0), (0, 0), (0, 0), (0, cp - cout), (0, m_total - m)))
    planes = planes.reshape(n_layers, n_planes * cin, cp, m_total)
    return planes.astype(weight_dtype)


def spectral_contract(x_pack, w_planes, idx, batch, cin, tm):
    """Per-retained-mode complex channel contraction of the selected layer.

    x_pack   : (2, batch*Cin, M_total) float32
    w_planes : (n_layers, n_planes*Cin, CP, M_total)
    idx      : (1,) int32 layer index (scalar prefetch)
    returns  : (2, batch, CP, M_total) float32
    """
    _, rows, m_total = x_pack.shape
    _, pcin, cp, _ = w_planes.shape
    n_planes = pcin // cin
    assert rows == batch * cin and n_planes * cin == pcin
    assert m_total % tm == 0
    grid = (m_total // tm,)
    w_bytes = jnp.dtype(w_planes.dtype).itemsize

    x_spec = pl.BlockSpec((2, rows, tm), lambda mb, idx_ref: (0, 0, mb))
    # Layer axis squeezed; its block index comes from the scalar-prefetch layer
    # id, so the selected weight slab is never materialized separately in HBM.
    w_spec = pl.BlockSpec((None, pcin, cp, tm),
                          lambda mb, idx_ref: (idx_ref[0], 0, 0, mb))
    o_spec = pl.BlockSpec((2, batch, cp, tm), lambda mb, idx_ref: (0, 0, 0, mb))

    flops = 8 * batch * cp * cin * m_total
    bytes_accessed = (4 * 2 * rows * m_total
                      + w_bytes * pcin * cp * m_total
                      + 4 * 2 * batch * cp * m_total)

    return pl.pallas_call(
        _make_spectral_kernel(batch, cin, n_planes),
        out_shape=jax.ShapeDtypeStruct((2, batch, cp, m_total), jnp.float32),
        grid_spec=pltpu.PrefetchScalarGridSpec(
            num_scalar_prefetch=1,
            grid=grid,
            in_specs=[x_spec, w_spec],
            out_specs=o_spec,
        ),
        compiler_params=pltpu.CompilerParams(
            dimension_semantics=("parallel",),
            vmem_limit_bytes=_vmem_budget_bytes(),
        ),
        cost_estimate=pl.CostEstimate(
            flops=flops, transcendentals=0, bytes_accessed=bytes_accessed),
    )(idx, x_pack, w_planes)


def sub_conv_forward(x, w_planes, indices, n_modes, cout):
    """SubConv.forward: spectral conv using the `indices`-th layer slice.

    x        : (B, Cin, H, W) float32, NCHW like PyTorch
    w_planes : from prepare_spectral_weights
    indices  : int / int32 scalar selecting the layer of the mother conv
    n_modes  : (m1, m2) retained Fourier modes (static)
    cout     : number of output channels (static, before padding)
    returns  : (B, cout, H, W) float32
    """
    B, cin, H, W = x.shape
    m1, m2 = n_modes
    m2h = m2 // 2 + 1
    assert 2 * m1 <= H, "retained row-mode windows must not overlap"
    assert m2h <= W // 2 + 1, "retained column modes exceed the rfft width"
    m = 2 * m1 * m2h

    _, pcin, cp, m_total = w_planes.shape
    n_planes = pcin // cin
    assert n_planes in (2, 3) and n_planes * cin == pcin
    assert cp >= cout and m_total >= m and m_total % 128 == 0

    # Re-derive the mode tile; fall back to a dividing tile if w_planes was
    # prepared for a different batch size.
    tm = _pick_mode_tile(m, cin, B, cp, n_planes,
                         jnp.dtype(w_planes.dtype).itemsize)
    if m_total % tm != 0:
        tm = _largest_dividing_tile(m_total, tm)

    # ---- glue: forward FFT + retained-mode gather, packed straight into the
    # (2, B*Cin, M_total) kernel layout (stack/reshape/pad only, no transpose).
    # TODO(synk): rfft2/irfft2 have no Pallas TPU primitive; kept in plain JAX.
    x_ft = jnp.fft.rfft2(x, axes=(-2, -1))                  # (B,Cin,H,W//2+1)
    modes = jnp.concatenate(
        [x_ft[:, :, :m1, :m2h], x_ft[:, :, H - m1:, :m2h]], axis=2)
    modes = modes.reshape(B, cin, m)
    x_pack = jnp.stack([jnp.real(modes), jnp.imag(modes)], axis=0)
    x_pack = x_pack.reshape(2, B * cin, m).astype(jnp.float32)
    x_pack = jnp.pad(x_pack, ((0, 0), (0, 0), (0, m_total - m)))

    idx = jnp.asarray(indices, dtype=jnp.int32).reshape((1,))

    # ---- hot path: per-mode complex channel contraction (Pallas) ----
    out = spectral_contract(x_pack, w_planes, idx, B, cin, tm)

    # ---- glue: scatter retained modes back and inverse FFT (output layout is
    # already what the scatter consumes; only slicing, no transpose).
    out_modes = out[0, :, :cout, :m] + 1j * out[1, :, :cout, :m]
    out_modes = out_modes.reshape(B, cout, 2 * m1, m2h)
    out_ft = jnp.zeros((B, cout, H, W // 2 + 1), dtype=jnp.complex64)
    out_ft = out_ft.at[:, :, :m1, :m2h].set(out_modes[:, :, :m1])
    out_ft = out_ft.at[:, :, H - m1:, :m2h].set(out_modes[:, :, m1:])
    y = jnp.fft.irfft2(out_ft, s=(H, W), axes=(-2, -1))
    return y.astype(jnp.float32)


if __name__ == "__main__":
    # small deterministic setup
    B, Cin, Cout, H, W = 2, 4, 4, 16, 16
    n_layers = 3                 # "mother" joint conv holds several layers
    indices = 1                  # this SubConv's slice
    n_modes = (8, 8)             # retained Fourier modes (m1, m2)
    m1, m2 = n_modes
    m2h = m2 // 2 + 1

    key = jax.random.PRNGKey(0)
    kx, kr, ki = jax.random.split(key, 3)
    x = jax.random.normal(kx, (B, Cin, H, W), dtype=jnp.float32)

    scale = 1.0 / (Cin * Cout)
    w_real = scale * jax.random.normal(kr, (n_layers, Cin, Cout, 2 * m1, m2h),
                                       dtype=jnp.float32)
    w_imag = scale * jax.random.normal(ki, (n_layers, Cin, Cout, 2 * m1, m2h),
                                       dtype=jnp.float32)

    # pure-JAX reference of the same semantics
    x_ft = jnp.fft.rfft2(x, axes=(-2, -1))
    w_c = (w_real + 1j * w_imag)[indices]                  # (Cin,Cout,2m1,m2h)
    top = jnp.einsum("bixy,ioxy->boxy", x_ft[:, :, :m1, :m2h], w_c[:, :, :m1])
    bot = jnp.einsum("bixy,ioxy->boxy", x_ft[:, :, H - m1:, :m2h], w_c[:, :, m1:])
    out_ft = jnp.zeros((B, Cout, H, W // 2 + 1), jnp.complex64)
    out_ft = out_ft.at[:, :, :m1, :m2h].set(top)
    out_ft = out_ft.at[:, :, H - m1:, :m2h].set(bot)
    y_ref = jnp.fft.irfft2(out_ft, s=(H, W), axes=(-2, -1)).astype(jnp.float32)

    fwd = jax.jit(sub_conv_forward, static_argnums=(3, 4))

    # 1) f32 weights, 2-plane (wr, wi) layout — small-batch / v5e path
    w_planes = prepare_spectral_weights(w_real, w_imag, batch_size=B)
    y = jax.block_until_ready(fwd(x, w_planes, indices, n_modes, Cout))
    assert y.shape == (B, Cout, H, W)
    assert jnp.allclose(y, y_ref, atol=1e-5, rtol=1e-5)

    # 2) f32 weights, 3-plane (wr, wr+wi, wi-wr) layout — large-batch path
    w_planes3 = prepare_spectral_weights(w_real, w_imag, batch_size=16)
    y3 = jax.block_until_ready(fwd(x, w_planes3, indices, n_modes, Cout))
    assert jnp.allclose(y3, y_ref, atol=1e-5, rtol=1e-5)

    # 3) bf16 weight storage (halves the dominant HBM stream on v6e/v7x),
    #    f32 compute + accumulation in-kernel
    w_planes_bf = prepare_spectral_weights(w_real, w_imag, batch_size=B,
                                           weight_dtype=jnp.bfloat16)
    yb = jax.block_until_ready(fwd(x, w_planes_bf, indices, n_modes, Cout))
    assert jnp.allclose(yb, y_ref, atol=2e-2, rtol=2e-2)

    print("KERNEL_OK")
</pallas_src>

<mosaic_0001>
module attributes {stable_mosaic.version = 11 : i64} {
  func.func @kernel(%arg0: i32, %arg1: memref<1xi32, #tpu.memory_space<smem>>, %arg2: memref<2x8x128xf32, #tpu.memory_space<vmem>>, %arg3: memref<1x8x8x128xf32, #tpu.memory_space<vmem>>, %arg4: memref<2x2x8x128xf32, #tpu.memory_space<vmem>>) attributes {dimension_semantics = [#tpu.dimension_semantics<parallel>], iteration_bounds = array<i64: 1>, scalar_prefetch = 1 : i64, scratch_operands = 0 : i64, tpu.core_type = #tpu.core_type<tc>, window_params = [{transform_indices = @transform_0, window_bounds = array<i64: 2, 8, 128>}, {transform_indices = @transform_1, window_bounds = array<i64: 1, 8, 8, 128>}, {transform_indices = @transform_2, window_bounds = array<i64: 2, 2, 8, 128>}]} {
    %cst = arith.constant 0.000000e+00 : f32
    %0 = vector.broadcast %cst : f32 to vector<8x128xf32>
    %cst_0 = arith.constant 0.000000e+00 : f32
    %1 = vector.broadcast %cst_0 : f32 to vector<8x128xf32>
    %c0 = arith.constant 0 : index
    %c0_1 = arith.constant 0 : index
    %c0_2 = arith.constant 0 : index
    %2 = vector.load %arg2[%c0, %c0_1, %c0_2] : memref<2x8x128xf32, #tpu.memory_space<vmem>>, vector<1x1x128xf32>
    %3 = vector.shape_cast %2 : vector<1x1x128xf32> to vector<1x128xf32>
    %c1 = arith.constant 1 : index
    %c0_3 = arith.constant 0 : index
    %c0_4 = arith.constant 0 : index
    %4 = vector.load %arg2[%c1, %c0_3, %c0_4] : memref<2x8x128xf32, #tpu.memory_space<vmem>>, vector<1x1x128xf32>
    %5 = vector.shape_cast %4 : vector<1x1x128xf32> to vector<1x128xf32>
    %c0_5 = arith.constant 0 : index
    %c0_6 = arith.constant 0 : index
    %c0_7 = arith.constant 0 : index
    %c0_8 = arith.constant 0 : index
    %6 = vector.load %arg3[%c0_5, %c0_6, %c0_7, %c0_8] : memref<1x8x8x128xf32, #tpu.memory_space<vmem>>, vector<1x1x8x128xf32>
    %7 = vector.shape_cast %6 : vector<1x1x8x128xf32> to vector<8x128xf32>
    %c0_9 = arith.constant 0 : index
    %c4 = arith.constant 4 : index
    %c0_10 = arith.constant 0 : index
    %c0_11 = arith.constant 0 : index
    %8 = vector.load %arg3[%c0_9, %c4, %c0_10, %c0_11] : memref<1x8x8x128xf32, #tpu.memory_space<vmem>>, vector<1x1x8x128xf32>
    %9 = vector.shape_cast %8 : vector<1x1x8x128xf32> to vector<8x128xf32>
    %10 = vector.broadcast %3 : vector<1x128xf32> to vector<8x128xf32>
    %11 = arith.mulf %10, %7 : vector<8x128xf32>
    %12 = vector.broadcast %5 : vector<1x128xf32> to vector<8x128xf32>
    %13 = arith.mulf %12, %9 : vector<8x128xf32>
    %14 = arith.subf %11, %13 : vector<8x128xf32>
    %15 = arith.addf %0, %14 : vector<8x128xf32>
    %16 = vector.broadcast %3 : vector<1x128xf32> to vector<8x128xf32>
    %17 = arith.mulf %16, %9 : vector<8x128xf32>
    %18 = vector.broadcast %5 : vector<1x128xf32> to vector<8x128xf32>
    %19 = arith.mulf %18, %7 : vector<8x128xf32>
    %20 = arith.addf %17, %19 : vector<8x128xf32>
    %21 = arith.addf %1, %20 : vector<8x128xf32>
    %c0_12 = arith.constant 0 : index
    %c1_13 = arith.constant 1 : index
    %c0_14 = arith.constant 0 : index
    %22 = vector.load %arg2[%c0_12, %c1_13, %c0_14] : memref<2x8x128xf32, #tpu.memory_space<vmem>>, vector<1x1x128xf32>
    %23 = vector.shape_cast %22 : vector<1x1x128xf32> to vector<1x128xf32>
    %c1_15 = arith.constant 1 : index
    %c1_16 = arith.constant 1 : index
    %c0_17 = arith.constant 0 : index
    %24 = vector.load %arg2[%c1_15, %c1_16, %c0_17] : memref<2x8x128xf32, #tpu.memory_space<vmem>>, vector<1x1x128xf32>
    %25 = vector.shape_cast %24 : vector<1x1x128xf32> to vector<1x128xf32>
    %c0_18 = arith.constant 0 : index
    %c1_19 = arith.constant 1 : index
    %c0_20 = arith.constant 0 : index
    %c0_21 = arith.constant 0 : index
    %26 = vector.load %arg3[%c0_18, %c1_19, %c0_20, %c0_21] : memref<1x8x8x128xf32, #tpu.memory_space<vmem>>, vector<1x1x8x128xf32>
    %27 = vector.shape_cast %26 : vector<1x1x8x128xf32> to vector<8x128xf32>
    %c0_22 = arith.constant 0 : index
    %c5 = arith.constant 5 : index
    %c0_23 = arith.constant 0 : index
    %c0_24 = arith.constant 0 : index
    %28 = vector.load %arg3[%c0_22, %c5, %c0_23, %c0_24] : memref<1x8x8x128xf32, #tpu.memory_space<vmem>>, vector<1x1x8x128xf32>
    %29 = vector.shape_cast %28 : vector<1x1x8x128xf32> to vector<8x128xf32>
    %30 = vector.broadcast %23 : vector<1x128xf32> to vector<8x128xf32>
    %31 = arith.mulf %30, %27 : vector<8x128xf32>
    %32 = vector.broadcast %25 : vector<1x128xf32> to vector<8x128xf32>
    %33 = arith.mulf %32, %29 : vector<8x128xf32>
    %34 = arith.subf %31, %33 : vector<8x128xf32>
    %35 = arith.addf %15, %34 : vector<8x128xf32>
    %36 = vector.broadcast %23 : vector<1x128xf32> to vector<8x128xf32>
    %37 = arith.mulf %36, %29 : vector<8x128xf32>
    %38 = vector.broadcast %25 : vector<1x128xf32> to vector<8x128xf32>
    %39 = arith.mulf %38, %27 : vector<8x128xf32>
    %40 = arith.addf %37, %39 : vector<8x128xf32>
    %41 = arith.addf %21, %40 : vector<8x128xf32>
    %c0_25 = arith.constant 0 : index
    %c2 = arith.constant 2 : index
    %c0_26 = arith.constant 0 : index
    %42 = vector.load %arg2[%c0_25, %c2, %c0_26] : memref<2x8x128xf32, #tpu.memory_space<vmem>>, vector<1x1x128xf32>
    %43 = vector.shape_cast %42 : vector<1x1x128xf32> to vector<1x128xf32>
    %c1_27 = arith.constant 1 : index
    %c2_28 = arith.constant 2 : index
    %c0_29 = arith.constant 0 : index
    %44 = vector.load %arg2[%c1_27, %c2_28, %c0_29] : memref<2x8x128xf32, #tpu.memory_space<vmem>>, vector<1x1x128xf32>
    %45 = vector.shape_cast %44 : vector<1x1x128xf32> to vector<1x128xf32>
    %c0_30 = arith.constant 0 : index
    %c2_31 = arith.constant 2 : index
    %c0_32 = arith.constant 0 : index
    %c0_33 = arith.constant 0 : index
    %46 = vector.load %arg3[%c0_30, %c2_31, %c0_32, %c0_33] : memref<1x8x8x128xf32, #tpu.memory_space<vmem>>, vector<1x1x8x128xf32>
    %47 = vector.shape_cast %46 : vector<1x1x8x128xf32> to vector<8x128xf32>
    %c0_34 = arith.constant 0 : index
    %c6 = arith.constant 6 : index
    %c0_35 = arith.constant 0 : index
    %c0_36 = arith.constant 0 : index
    %48 = vector.load %arg3[%c0_34, %c6, %c0_35, %c0_36] : memref<1x8x8x128xf32, #tpu.memory_space<vmem>>, vector<1x1x8x128xf32>
    %49 = vector.shape_cast %48 : vector<1x1x8x128xf32> to vector<8x128xf32>
    %50 = vector.broadcast %43 : vector<1x128xf32> to vector<8x128xf32>
    %51 = arith.mulf %50, %47 : vector<8x128xf32>
    %52 = vector.broadcast %45 : vector<1x128xf32> to vector<8x128xf32>
    %53 = arith.mulf %52, %49 : vector<8x128xf32>
    %54 = arith.subf %51, %53 : vector<8x128xf32>
    %55 = arith.addf %35, %54 : vector<8x128xf32>
    %56 = vector.broadcast %43 : vector<1x128xf32> to vector<8x128xf32>
    %57 = arith.mulf %56, %49 : vector<8x128xf32>
    %58 = vector.broadcast %45 : vector<1x128xf32> to vector<8x128xf32>
    %59 = arith.mulf %58, %47 : vector<8x128xf32>
    %60 = arith.addf %57, %59 : vector<8x128xf32>
    %61 = arith.addf %41, %60 : vector<8x128xf32>
    %c0_37 = arith.constant 0 : index
    %c3 = arith.constant 3 : index
    %c0_38 = arith.constant 0 : index
    %62 = vector.load %arg2[%c0_37, %c3, %c0_38] : memref<2x8x128xf32, #tpu.memory_space<vmem>>, vector<1x1x128xf32>
    %63 = vector.shape_cast %62 : vector<1x1x128xf32> to vector<1x128xf32>
    %c1_39 = arith.constant 1 : index
    %c3_40 = arith.constant 3 : index
    %c0_41 = arith.constant 0 : index
    %64 = vector.load %arg2[%c1_39, %c3_40, %c0_41] : memref<2x8x128xf32, #tpu.memory_space<vmem>>, vector<1x1x128xf32>
    %65 = vector.shape_cast %64 : vector<1x1x128xf32> to vector<1x128xf32>
    %c0_42 = arith.constant 0 : index
    %c3_43 = arith.constant 3 : index
    %c0_44 = arith.constant 0 : index
    %c0_45 = arith.constant 0 : index
    %66 = vector.load %arg3[%c0_42, %c3_43, %c0_44, %c0_45] : memref<1x8x8x128xf32, #tpu.memory_space<vmem>>, vector<1x1x8x128xf32>
    %67 = vector.shape_cast %66 : vector<1x1x8x128xf32> to vector<8x128xf32>
    %c0_46 = arith.constant 0 : index
    %c7 = arith.constant 7 : index
    %c0_47 = arith.constant 0 : index
    %c0_48 = arith.constant 0 : index
    %68 = vector.load %arg3[%c0_46, %c7, %c0_47, %c0_48] : memref<1x8x8x128xf32, #tpu.memory_space<vmem>>, vector<1x1x8x128xf32>
    %69 = vector.shape_cast %68 : vector<1x1x8x128xf32> to vector<8x128xf32>
    %70 = vector.broadcast %63 : vector<1x128xf32> to vector<8x128xf32>
    %71 = arith.mulf %70, %67 : vector<8x128xf32>
    %72 = vector.broadcast %65 : vector<1x128xf32> to vector<8x128xf32>
    %73 = arith.mulf %72, %69 : vector<8x128xf32>
    %74 = arith.subf %71, %73 : vector<8x128xf32>
    %75 = arith.addf %55, %74 : vector<8x128xf32>
    %76 = vector.broadcast %63 : vector<1x128xf32> to vector<8x128xf32>
    %77 = arith.mulf %76, %69 : vector<8x128xf32>
    %78 = vector.broadcast %65 : vector<1x128xf32> to vector<8x128xf32>
    %79 = arith.mulf %78, %67 : vector<8x128xf32>
    %80 = arith.addf %77, %79 : vector<8x128xf32>
    %81 = arith.addf %61, %80 : vector<8x128xf32>
    %c0_49 = arith.constant 0 : index
    %c0_50 = arith.constant 0 : index
    %c0_51 = arith.constant 0 : index
    %c0_52 = arith.constant 0 : index
    %82 = vector.load %arg4[%c0_49, %c0_50, %c0_51, %c0_52] : memref<2x2x8x128xf32, #tpu.memory_space<vmem>>, vector<1x1x8x128xf32>
    %83 = vector.shape_cast %82 : vector<1x1x8x128xf32> to vector<8x128xf32>
    %84 = vector.shape_cast %75 : vector<8x128xf32> to vector<1x1x8x128xf32>
    tpu.vector_store %arg4[%c0_49, %c0_50, %c0_51, %c0_52], %84 {strides = array<i32>} : memref<2x2x8x128xf32, #tpu.memory_space<vmem>>, vector<1x1x8x128xf32>,
    %c1_53 = arith.constant 1 : index
    %c0_54 = arith.constant 0 : index
    %c0_55 = arith.constant 0 : index
    %c0_56 = arith.constant 0 : index
    %85 = vector.load %arg4[%c1_53, %c0_54, %c0_55, %c0_56] : memref<2x2x8x128xf32, #tpu.memory_space<vmem>>, vector<1x1x8x128xf32>
    %86 = vector.shape_cast %85 : vector<1x1x8x128xf32> to vector<8x128xf32>
    %87 = vector.shape_cast %81 : vector<8x128xf32> to vector<1x1x8x128xf32>
    tpu.vector_store %arg4[%c1_53, %c0_54, %c0_55, %c0_56], %87 {strides = array<i32>} : memref<2x2x8x128xf32, #tpu.memory_space<vmem>>, vector<1x1x8x128xf32>,
    %cst_57 = arith.constant 0.000000e+00 : f32
    %88 = vector.broadcast %cst_57 : f32 to vector<8x128xf32>
    %cst_58 = arith.constant 0.000000e+00 : f32
    %89 = vector.broadcast %cst_58 : f32 to vector<8x128xf32>
    %c0_59 = arith.constant 0 : index
    %c4_60 = arith.constant 4 : index
    %c0_61 = arith.constant 0 : index
    %90 = vector.load %arg2[%c0_59, %c4_60, %c0_61] : memref<2x8x128xf32, #tpu.memory_space<vmem>>, vector<1x1x128xf32>
    %91 = vector.shape_cast %90 : vector<1x1x128xf32> to vector<1x128xf32>
    %c1_62 = arith.constant 1 : index
    %c4_63 = arith.constant 4 : index
    %c0_64 = arith.constant 0 : index
    %92 = vector.load %arg2[%c1_62, %c4_63, %c0_64] : memref<2x8x128xf32, #tpu.memory_space<vmem>>, vector<1x1x128xf32>
    %93 = vector.shape_cast %92 : vector<1x1x128xf32> to vector<1x128xf32>
    %c0_65 = arith.constant 0 : index
    %c0_66 = arith.constant 0 : index
    %c0_67 = arith.constant 0 : index
    %c0_68 = arith.constant 0 : index
    %94 = vector.load %arg3[%c0_65, %c0_66, %c0_67, %c0_68] : memref<1x8x8x128xf32, #tpu.memory_space<vmem>>, vector<1x1x8x128xf32>
    %95 = vector.shape_cast %94 : vector<1x1x8x128xf32> to vector<8x128xf32>
    %c0_69 = arith.constant 0 : index
    %c4_70 = arith.constant 4 : index
    %c0_71 = arith.constant 0 : index
    %c0_72 = arith.constant 0 : index
    %96 = vector.load %arg3[%c0_69, %c4_70, %c0_71, %c0_72] : memref<1x8x8x128xf32, #tpu.memory_space<vmem>>, vector<1x1x8x128xf32>
    %97 = vector.shape_cast %96 : vector<1x1x8x128xf32> to vector<8x128xf32>
    %98 = vector.broadcast %91 : vector<1x128xf32> to vector<8x128xf32>
    %99 = arith.mulf %98, %95 : vector<8x128xf32>
    %100 = vector.broadcast %93 : vector<1x128xf32> to vector<8x128xf32>
    %101 = arith.mulf %100, %97 : vector<8x128xf32>
    %102 = arith.subf %99, %101 : vector<8x128xf32>
    %103 = arith.addf %88, %102 : vector<8x128xf32>
    %104 = vector.broadcast %91 : vector<1x128xf32> to vector<8x128xf32>
    %105 = arith.mulf %104, %97 : vector<8x128xf32>
    %106 = vector.broadcast %93 : vector<1x128xf32> to vector<8x128xf32>
    %107 = arith.mulf %106, %95 : vector<8x128xf32>
    %108 = arith.addf %105, %107 : vector<8x128xf32>
    %109 = arith.addf %89, %108 : vector<8x128xf32>
    %c0_73 = arith.constant 0 : index
    %c5_74 = arith.constant 5 : index
    %c0_75 = arith.constant 0 : index
    %110 = vector.load %arg2[%c0_73, %c5_74, %c0_75] : memref<2x8x128xf32, #tpu.memory_space<vmem>>, vector<1x1x128xf32>
    %111 = vector.shape_cast %110 : vector<1x1x128xf32> to vector<1x128xf32>
    %c1_76 = arith.constant 1 : index
    %c5_77 = arith.constant 5 : index
    %c0_78 = arith.constant 0 : index
    %112 = vector.load %arg2[%c1_76, %c5_77, %c0_78] : memref<2x8x128xf32, #tpu.memory_space<vmem>>, vector<1x1x128xf32>
    %113 = vector.shape_cast %112 : vector<1x1x128xf32> to vector<1x128xf32>
    %c0_79 = arith.constant 0 : index
    %c1_80 = arith.constant 1 : index
    %c0_81 = arith.constant 0 : index
    %c0_82 = arith.constant 0 : index
    %114 = vector.load %arg3[%c0_79, %c1_80, %c0_81, %c0_82] : memref<1x8x8x128xf32, #tpu.memory_space<vmem>>, vector<1x1x8x128xf32>
    %115 = vector.shape_cast %114 : vector<1x1x8x128xf32> to vector<8x128xf32>
    %c0_83 = arith.constant 0 : index
    %c5_84 = arith.constant 5 : index
    %c0_85 = arith.constant 0 : index
    %c0_86 = arith.constant 0 : index
    %116 = vector.load %arg3[%c0_83, %c5_84, %c0_85, %c0_86] : memref<1x8x8x128xf32, #tpu.memory_space<vmem>>, vector<1x1x8x128xf32>
    %117 = vector.shape_cast %116 : vector<1x1x8x128xf32> to vector<8x128xf32>
    %118 = vector.broadcast %111 : vector<1x128xf32> to vector<8x128xf32>
    %119 = arith.mulf %118, %115 : vector<8x128xf32>
    %120 = vector.broadcast %113 : vector<1x128xf32> to vector<8x128xf32>
    %121 = arith.mulf %120, %117 : vector<8x128xf32>
    %122 = arith.subf %119, %121 : vector<8x128xf32>
    %123 = arith.addf %103, %122 : vector<8x128xf32>
    %124 = vector.broadcast %111 : vector<1x128xf32> to vector<8x128xf32>
    %125 = arith.mulf %124, %117 : vector<8x128xf32>
    %126 = vector.broadcast %113 : vector<1x128xf32> to vector<8x128xf32>
    %127 = arith.mulf %126, %115 : vector<8x128xf32>
    %128 = arith.addf %125, %127 : vector<8x128xf32>
    %129 = arith.addf %109, %128 : vector<8x128xf32>
    %c0_87 = arith.constant 0 : index
    %c6_88 = arith.constant 6 : index
    %c0_89 = arith.constant 0 : index
    %130 = vector.load %arg2[%c0_87, %c6_88, %c0_89] : memref<2x8x128xf32, #tpu.memory_space<vmem>>, vector<1x1x128xf32>
    %131 = vector.shape_cast %130 : vector<1x1x128xf32> to vector<1x128xf32>
    %c1_90 = arith.constant 1 : index
    %c6_91 = arith.constant 6 : index
    %c0_92 = arith.constant 0 : index
    %132 = vector.load %arg2[%c1_90, %c6_91, %c0_92] : memref<2x8x128xf32, #tpu.memory_space<vmem>>, vector<1x1x128xf32>
    %133 = vector.shape_cast %132 : vector<1x1x128xf32> to vector<1x128xf32>
    %c0_93 = arith.constant 0 : index
    %c2_94 = arith.constant 2 : index
    %c0_95 = arith.constant 0 : index
    %c0_96 = arith.constant 0 : index
    %134 = vector.load %arg3[%c0_93, %c2_94, %c0_95, %c0_96] : memref<1x8x8x128xf32, #tpu.memory_space<vmem>>, vector<1x1x8x128xf32>
    %135 = vector.shape_cast %134 : vector<1x1x8x128xf32> to vector<8x128xf32>
    %c0_97 = arith.constant 0 : index
    %c6_98 = arith.constant 6 : index
    %c0_99 = arith.constant 0 : index
    %c0_100 = arith.constant 0 : index
    %136 = vector.load %arg3[%c0_97, %c6_98, %c0_99, %c0_100] : memref<1x8x8x128xf32, #tpu.memory_space<vmem>>, vector<1x1x8x128xf32>
    %137 = vector.shape_cast %136 : vector<1x1x8x128xf32> to vector<8x128xf32>
    %138 = vector.broadcast %131 : vector<1x128xf32> to vector<8x128xf32>
    %139 = arith.mulf %138, %135 : vector<8x128xf32>
    %140 = vector.broadcast %133 : vector<1x128xf32> to vector<8x128xf32>
    %141 = arith.mulf %140, %137 : vector<8x128xf32>
    %142 = arith.subf %139, %141 : vector<8x128xf32>
    %143 = arith.addf %123, %142 : vector<8x128xf32>
    %144 = vector.broadcast %131 : vector<1x128xf32> to vector<8x128xf32>
    %145 = arith.mulf %144, %137 : vector<8x128xf32>
    %146 = vector.broadcast %133 : vector<1x128xf32> to vector<8x128xf32>
    %147 = arith.mulf %146, %135 : vector<8x128xf32>
    %148 = arith.addf %145, %147 : vector<8x128xf32>
    %149 = arith.addf %129, %148 : vector<8x128xf32>
    %c0_101 = arith.constant 0 : index
    %c7_102 = arith.constant 7 : index
    %c0_103 = arith.constant 0 : index
    %150 = vector.load %arg2[%c0_101, %c7_102, %c0_103] : memref<2x8x128xf32, #tpu.memory_space<vmem>>, vector<1x1x128xf32>
    %151 = vector.shape_cast %150 : vector<1x1x128xf32> to vector<1x128xf32>
    %c1_104 = arith.constant 1 : index
    %c7_105 = arith.constant 7 : index
    %c0_106 = arith.constant 0 : index
    %152 = vector.load %arg2[%c1_104, %c7_105, %c0_106] : memref<2x8x128xf32, #tpu.memory_space<vmem>>, vector<1x1x128xf32>
    %153 = vector.shape_cast %152 : vector<1x1x128xf32> to vector<1x128xf32>
    %c0_107 = arith.constant 0 : index
    %c3_108 = arith.constant 3 : index
    %c0_109 = arith.constant 0 : index
    %c0_110 = arith.constant 0 : index
    %154 = vector.load %arg3[%c0_107, %c3_108, %c0_109, %c0_110] : memref<1x8x8x128xf32, #tpu.memory_space<vmem>>, vector<1x1x8x128xf32>
    %155 = vector.shape_cast %154 : vector<1x1x8x128xf32> to vector<8x128xf32>
    %c0_111 = arith.constant 0 : index
    %c7_112 = arith.constant 7 : index
    %c0_113 = arith.constant 0 : index
    %c0_114 = arith.constant 0 : index
    %156 = vector.load %arg3[%c0_111, %c7_112, %c0_113, %c0_114] : memref<1x8x8x128xf32, #tpu.memory_space<vmem>>, vector<1x1x8x128xf32>
    %157 = vector.shape_cast %156 : vector<1x1x8x128xf32> to vector<8x128xf32>
    %158 = vector.broadcast %151 : vector<1x128xf32> to vector<8x128xf32>
    %159 = arith.mulf %158, %155 : vector<8x128xf32>
    %160 = vector.broadcast %153 : vector<1x128xf32> to vector<8x128xf32>
    %161 = arith.mulf %160, %157 : vector<8x128xf32>
    %162 = arith.subf %159, %161 : vector<8x128xf32>
    %163 = arith.addf %143, %162 : vector<8x128xf32>
    %164 = vector.broadcast %151 : vector<1x128xf32> to vector<8x128xf32>
    %165 = arith.mulf %164, %157 : vector<8x128xf32>
    %166 = vector.broadcast %153 : vector<1x128xf32> to vector<8x128xf32>
    %167 = arith.mulf %166, %155 : vector<8x128xf32>
    %168 = arith.addf %165, %167 : vector<8x128xf32>
    %169 = arith.addf %149, %168 : vector<8x128xf32>
    %c0_115 = arith.constant 0 : index
    %c1_116 = arith.constant 1 : index
    %c0_117 = arith.constant 0 : index
    %c0_118 = arith.constant 0 : index
    %170 = vector.load %arg4[%c0_115, %c1_116, %c0_117, %c0_118] : memref<2x2x8x128xf32, #tpu.memory_space<vmem>>, vector<1x1x8x128xf32>
    %171 = vector.shape_cast %170 : vector<1x1x8x128xf32> to vector<8x128xf32>
    %172 = vector.shape_cast %163 : vector<8x128xf32> to vector<1x1x8x128xf32>
    tpu.vector_store %arg4[%c0_115, %c1_116, %c0_117, %c0_118], %172 {strides = array<i32>} : memref<2x2x8x128xf32, #tpu.memory_space<vmem>>, vector<1x1x8x128xf32>,
    %c1_119 = arith.constant 1 : index
    %c1_120 = arith.constant 1 : index
    %c0_121 = arith.constant 0 : index
    %c0_122 = arith.constant 0 : index
    %173 = vector.load %arg4[%c1_119, %c1_120, %c0_121, %c0_122] : memref<2x2x8x128xf32, #tpu.memory_space<vmem>>, vector<1x1x8x128xf32>
    %174 = vector.shape_cast %173 : vector<1x1x8x128xf32> to vector<8x128xf32>
    %175 = vector.shape_cast %169 : vector<8x128xf32> to vector<1x1x8x128xf32>
    tpu.vector_store %arg4[%c1_119, %c1_120, %c0_121, %c0_122], %175 {strides = array<i32>} : memref<2x2x8x128xf32, #tpu.memory_space<vmem>>, vector<1x1x8x128xf32>,
    return
  }
  func.func @transform_0(%arg0: i32, %arg1: memref<1xi32, #tpu.memory_space<smem>>) -> (i32, i32, i32) {
    %c0_i32 = arith.constant 0 : i32
    %c0_i32_0 = arith.constant 0 : i32
    %c0_i32_1 = arith.constant 0 : i32
    return %c0_i32, %c0_i32_0, %arg0 : i32, i32, i32
  }
  func.func @transform_1(%arg0: i32, %arg1: memref<1xi32, #tpu.memory_space<smem>>) -> (i32, i32, i32, i32) {
    %c0 = arith.constant 0 : index
    %0 = memref.load %arg1[%c0] : memref<1xi32, #tpu.memory_space<smem>>
    %c0_i32 = arith.constant 0 : i32
    %c0_i32_0 = arith.constant 0 : i32
    %c0_i32_1 = arith.constant 0 : i32
    return %0, %c0_i32, %c0_i32_0, %arg0 : i32, i32, i32, i32
  }
  func.func @transform_2(%arg0: i32, %arg1: memref<1xi32, #tpu.memory_space<smem>>) -> (i32, i32, i32, i32) {
    %c0_i32 = arith.constant 0 : i32
    %c0_i32_0 = arith.constant 0 : i32
    %c0_i32_1 = arith.constant 0 : i32
    %c0_i32_2 = arith.constant 0 : i32
    return %c0_i32, %c0_i32_0, %c0_i32_1, %arg0 : i32, i32, i32, i32
  }
}

</mosaic_0001>

<bundles_post_ra>
// kernel: reverse.0
= control target key start
LH: loop header
LB: loop body
LE: loop exit
PB: predicated region body
PF: predicated region fallthrough
CT: control target
= control target key end

     0   :  { %v71_v3 = vlaneseq  ;;  %v64_v9 = vld [vmem:[#allocation0 + $0x7] ss:$-1 sm:$0xff]  ;;  %v78_v12 = vld [vmem:[#allocation0 + $0x17] ss:$-1 sm:$0xff]  ;;  %s329_s0 = inlined_call_operand.vmem [shape: f32[2,4,16,7], index: 0, kind: input, shape index: {}]   ;;  %s330_s1 = inlined_call_operand.vmem [shape: f32[2,4,16,7], index: 1, kind: output, shape index: {}]  }
   0x1   :  { %v44_v0 = vld [vmem:[%s329_s0] sm:$0xff]  ;;  %v46_v1 = vld [vmem:[%s329_s0 + $0x8] sm:$0xff]  ;;  %v48_v2 = vld [vmem:[%s329_s0 + $0x10] sm:$0xff]  ;;  %v65_v10 = vrot.slane %v64_v9, 1  ;;  %v79_v14 = vrot.slane %v78_v12, 1 }
   0x2   :  { %45 = vst [vmem:[#allocation0 + $0x8] sm:$0xff] %v44_v0  ;;  %47 = vst [vmem:[#allocation0 + $0x18] sm:$0xff] %v46_v1  ;;  %v50_v4 = vld [vmem:[%s329_s0 + $0x18] sm:$0xff]  ;;  %v52_v5 = vld [vmem:[%s329_s0 + $0x20] sm:$0xff]  ;;  %v72_v11 = vshrl.u32 %v71_v3, 7 }
   0x3   :  { %49 = vst [vmem:[#allocation0 + $0x28] sm:$0xff] %v48_v2  ;;  %v54_v6 = vld [vmem:[%s329_s0 + $0x28] sm:$0xff]  ;;  %51 = vst [vmem:[#allocation0 + $0x38] sm:$0xff] %v50_v4  ;;  %v56_v7 = vld [vmem:[%s329_s0 + $0x30] sm:$0xff] }
   0x4   :  { %53 = vst [vmem:[#allocation0 + $0x48] sm:$0xff] %v52_v5  ;;  %55 = vst [vmem:[#allocation0 + $0x58] sm:$0xff] %v54_v6  ;;  %v58_v8 = vld [vmem:[%s329_s0 + $0x38] sm:$0xff]  ;;  %v92_v13 = vld [vmem:[#allocation0 + $0x27] ss:$-1 sm:$0xff]  ;;  %vm73_vm0 = vcmp.lt.s32.totalorder %v72_v11, 7 }
   0x5   :  { %57 = vst [vmem:[#allocation0 + $0x68] sm:$0xff] %v56_v7  ;;  %59 = vst [vmem:[#allocation0 + $0x78] sm:$0xff] %v58_v8  ;;  %v93_v15 = vrot.slane %v92_v13, 1  ;;  %v106_v16 = vld [vmem:[#allocation0 + $0x37] ss:$-1 sm:$0xff] }
   0x6   :  { %66 = vst [vmem:[#allocation1] sm:$0xff] %v65_v10  ;;  %v107_v17 = vrot.slane %v106_v16, 1  ;;  %v120_v18 = vld [vmem:[#allocation0 + $0x47] ss:$-1 sm:$0xff]  ;;  %v134_v19 = vld [vmem:[#allocation0 + $0x57] ss:$-1 sm:$0xff] }
   0x7   :  { %80 = vst [vmem:[#allocation1 + $0x8] sm:$0xff] %v79_v14  ;;  %94 = vst [vmem:[#allocation1 + $0x10] sm:$0xff] %v93_v15  ;;  %v121_v20 = vrot.slane %v120_v18, 1  ;;  %v135_v21 = vrot.slane %v134_v19, 1  ;;  %v148_v22 = vld [vmem:[#allocation0 + $0x67] ss:$-1 sm:$0xff] }
   0x8   :  { %v162_v23 = vld [vmem:[#allocation0 + $0x77] ss:$-1 sm:$0xff]  ;;  %108 = vst [vmem:[#allocation1 + $0x18] sm:$0xff] %v107_v17  ;;  %v149_v24 = vrot.slane %v148_v22, 1 }
   0x9   :  { %v163_v25 = vrot.slane %v162_v23, 1  ;;  %v69_v26 = vld [vmem:[#allocation0 + $0xf] ss:$-1 sm:$0xff]  ;;  %v83_v27 = vld [vmem:[#allocation0 + $0x1f] ss:$-1 sm:$0xff]  ;;  %122 = vst [vmem:[#allocation1 + $0x20] sm:$0xff] %v121_v20 }
   0xa   :  { %v97_v28 = vld [vmem:[#allocation0 + $0x2f] ss:$-1 sm:$0xff]  ;;  %136 = vst [vmem:[#allocation1 + $0x28] sm:$0xff] %v135_v21  ;;  %v70_v29 = vrot.slane %v69_v26, 1  ;;  %v84_v30 = vrot.slane %v83_v27, 1  ;;  %150 = vst [vmem:[#allocation1 + $0x30] sm:$0xff] %v149_v24 }
   0xb   :  { %v98_v31 = vrot.slane %v97_v28, 1  ;;  %v111_v32 = vld [vmem:[#allocation0 + $0x3f] ss:$-1 sm:$0xff]  ;;  %164 = vst [vmem:[#allocation1 + $0x38] sm:$0xff] %v163_v25  ;;  %v125_v34 = vld [vmem:[#allocation0 + $0x4f] ss:$-1 sm:$0xff] }
   0xc   :  { %v112_v33 = vrot.slane %v111_v32, 1  ;;  %v139_v35 = vld [vmem:[#allocation0 + $0x5f] ss:$-1 sm:$0xff]  ;;  %74 = vst.msk [vmem:[#allocation1] sm:$0xff] %vm73_vm0, %v70_v29  ;;  %88 = vst.msk [vmem:[#allocation1 + $0x8] sm:$0xff] %vm73_vm0, %v84_v30  ;;  %v126_v36 = vrot.slane %v125_v34, 1 }
   0xd   :  { %102 = vst.msk [vmem:[#allocation1 + $0x10] sm:$0xff] %vm73_vm0, %v98_v31  ;;  %v140_v37 = vrot.slane %v139_v35, 1  ;;  %v153_v38 = vld [vmem:[#allocation0 + $0x6f] ss:$-1 sm:$0xff]  ;;  %v167_v39 = vld [vmem:[#allocation0 + $0x7f] ss:$-1 sm:$0xff] }
   0xe   :  { %116 = vst.msk [vmem:[#allocation1 + $0x18] sm:$0xff] %vm73_vm0, %v112_v33  ;;  %v154_v40 = vrot.slane %v153_v38, 1  ;;  %v168_v41 = vrot.slane %v167_v39, 1  ;;  %130 = vst.msk [vmem:[#allocation1 + $0x20] sm:$0xff] %vm73_vm0, %v126_v36 }
   0xf   :  { %144 = vst.msk [vmem:[#allocation1 + $0x28] sm:$0xff] %vm73_vm0, %v140_v37 }
  0x10   :  { %158 = vst.msk [vmem:[#allocation1 + $0x30] sm:$0xff] %vm73_vm0, %v154_v40  ;;  %172 = vst.msk [vmem:[#allocation1 + $0x38] sm:$0xff] %vm73_vm0, %v168_v41 }
  0x13   :  { %v214_v42 = vld [vmem:[#allocation1] sm:$0xff]  ;;  %v216_v43 = vld [vmem:[#allocation1 + $0x8] sm:$0xff] }
  0x14   :  { %v218_v44 = vld [vmem:[#allocation1 + $0x10] sm:$0xff]  ;;  %215 = vst [vmem:[%s330_s1] sm:$0xff] %v214_v42  ;;  %217 = vst [vmem:[%s330_s1 + $0x8] sm:$0xff] %v216_v43 }
  0x15   :  { %219 = vst [vmem:[%s330_s1 + $0x10] sm:$0xff] %v218_v44  ;;  %v220_v45 = vld [vmem:[#allocation1 + $0x18] sm:$0xff]  ;;  %v222_v46 = vld [vmem:[#allocation1 + $0x20] sm:$0xff] }
  0x16   :  { %221 = vst [vmem:[%s330_s1 + $0x18] sm:$0xff] %v220_v45  ;;  %v224_v47 = vld [vmem:[#allocation1 + $0x28] sm:$0xff]  ;;  %223 = vst [vmem:[%s330_s1 + $0x20] sm:$0xff] %v222_v46 }
  0x17   :  { %225 = vst [vmem:[%s330_s1 + $0x28] sm:$0xff] %v224_v47  ;;  %v226_v48 = vld [vmem:[#allocation1 + $0x30] sm:$0xff]  ;;  %v228_v49 = vld [vmem:[#allocation1 + $0x38] sm:$0xff] }
  0x18   :  { %227 = vst [vmem:[%s330_s1 + $0x30] sm:$0xff] %v226_v48  ;;  %229 = vst [vmem:[%s330_s1 + $0x38] sm:$0xff] %v228_v49 }

// kernel: sub_conv_forward.1
= control target key start
LH: loop header
LB: loop body
LE: loop exit
PB: predicated region body
PF: predicated region fallthrough
CT: control target
= control target key end

     0   :  { %s351_s0 = inlined_call_operand.<no memory space> [shape: s32[1], index: 0, kind: input, shape index: {}]   ;;  %s352_s1 = inlined_call_operand.vmem [shape: f32[2,8,128], index: 1, kind: input, shape index: {}]   ;;  %s353_s2 = inlined_call_operand.vmem [shape: f32[3,8,8,128], index: 2, kind: input, shape index: {}]   ;;  %s354_s3 = inlined_call_operand.vmem [shape: f32[2,2,8,128], index: 3, kind: output, shape index: {}]  }
   0x1   :  { %p27_p0 = scmp.lt.s32.totalorder %s351_s0, 2  ;;  %v222_v0 = vld [vmem:[%s352_s1] ss:$0 sm:$0xff]  ;;  %v223_v1 = vld [vmem:[%s352_s1 + $0x8] ss:$0 sm:$0xff] }
   0x2   :  { %v227_v2 = vld [vmem:[%s352_s1 + $0x1] ss:$0 sm:$0xff]  ;;  %v228_v3 = vld [vmem:[%s352_s1 + $0x9] ss:$0 sm:$0xff]  ;;  %v232_v4 = vld [vmem:[%s352_s1 + $0x2] ss:$0 sm:$0xff] }
   0x3   :  { %s356_s0 = smov (!%p27_p0, %s351_s0), 2  ;;  %v233_v5 = vld [vmem:[%s352_s1 + $0xa] ss:$0 sm:$0xff]  ;;  %v237_v6 = vld [vmem:[%s352_s1 + $0x3] ss:$0 sm:$0xff] }
   0x4   :  { %s261_s22 = sshll.u32 %s356_s0, 6  ;;  %v238_v7 = vld [vmem:[%s352_s1 + $0xb] ss:$0 sm:$0xff]  ;;  %v242_v28 = vld [vmem:[%s352_s1 + $0x4] ss:$0 sm:$0xff] }
   0x5   :  { %s31_s29 = scalar_lea.vmem %s353_s2, %s261_s22  ;;  %v243_v33 = vld [vmem:[%s352_s1 + $0xc] ss:$0 sm:$0xff]  ;;  %v247_v34 = vld [vmem:[%s352_s1 + $0x5] ss:$0 sm:$0xff]  ;;  %v248_v35 = vld [vmem:[%s352_s1 + $0xd] ss:$0 sm:$0xff] }
   0x6   :  { %v36_v8 = vld [vmem:[%s31_s29] sm:$0xff]  ;;  %v225_v10 = vld [vmem:[%s31_s29 + $0x8] sm:$0xff]  ;;  %v230_v15 = vld [vmem:[%s31_s29 + $0x10] sm:$0xff] }
   0x7   :  { %v221_v9 = vld [vmem:[%s31_s29 + $0x20] sm:$0xff]  ;;  %v43_v11 = vmul.f32 %v222_v0, %v36_v8  ;;  %v226_v13 = vld [vmem:[%s31_s29 + $0x28] sm:$0xff]  ;;  %v65_v14 = vmul.f32 %v227_v2, %v225_v10  ;;  %v231_v16 = vld [vmem:[%s31_s29 + $0x30] sm:$0xff]  ;;  %v87_v19 = vmul.f32 %v232_v4, %v230_v15  ;;  %v52_v23 = vmul.f32 %v223_v1, %v36_v8 }
   0x8   :  { %v48_v12 = vmul.f32 %v223_v1, %v221_v9  ;;  %v51_v17 = vmul.f32 %v222_v0, %v221_v9  ;;  %v70_v18 = vmul.f32 %v228_v3, %v226_v13  ;;  %v92_v20 = vmul.f32 %v233_v5, %v231_v16  ;;  %v235_v21 = vld [vmem:[%s31_s29 + $0x18] sm:$0xff]  ;;  %v252_v40 = vld [vmem:[%s352_s1 + $0x6] ss:$0 sm:$0xff]  ;;  %v253_v45 = vld [vmem:[%s352_s1 + $0xe] ss:$0 sm:$0xff] }
   0x9   :  { %v236_v22 = vld [vmem:[%s31_s29 + $0x38] sm:$0xff]  ;;  %v109_v25 = vmul.f32 %v237_v6, %v235_v21  ;;  %v73_v27 = vmul.f32 %v227_v2, %v226_v13  ;;  %v74_v32 = vmul.f32 %v228_v3, %v225_v10  ;;  %v95_v37 = vmul.f32 %v232_v4, %v231_v16  ;;  %v257_v46 = vld [vmem:[%s352_s1 + $0x7] ss:$0 sm:$0xff]  ;;  %v258_v51 = vld [vmem:[%s352_s1 + $0xf] ss:$0 sm:$0xff] }
   0xa   :  { %v49_v24 = vsub.f32 %v43_v11, %v48_v12  ;;  %v114_v26 = vmul.f32 %v238_v7, %v236_v22  ;;  %v71_v29 = vsub.f32 %v65_v14, %v70_v18  ;;  %v93_v30 = vsub.f32 %v87_v19, %v92_v20 }
   0xb   :  { %v53_v31 = vadd.f32 %v52_v23, %v51_v17  ;;  %v96_v38 = vmul.f32 %v233_v5, %v230_v15  ;;  %v117_v39 = vmul.f32 %v237_v6, %v236_v22  ;;  %v75_v42 = vadd.f32 %v74_v32, %v73_v27 }
   0xc   :  { %v115_v36 = vsub.f32 %v109_v25, %v114_v26  ;;  %v72_v41 = vadd.f32 %v71_v29, %v49_v24  ;;  %v118_v43 = vmul.f32 %v238_v7, %v235_v21  ;;  %v132_v44 = vmul.f32 %v242_v28, %v36_v8 }
   0xd   :  { %v97_v47 = vadd.f32 %v96_v38, %v95_v37  ;;  %v137_v48 = vmul.f32 %v243_v33, %v221_v9  ;;  %v152_v49 = vmul.f32 %v247_v34, %v225_v10  ;;  %v157_v50 = vmul.f32 %v248_v35, %v226_v13 }
   0xe   :  { %v94_v52 = vadd.f32 %v93_v30, %v72_v41  ;;  %v76_v53 = vadd.f32 %v75_v42, %v53_v31  ;;  %v119_v54 = vadd.f32 %v118_v43, %v117_v39  ;;  %v172_v55 = vmul.f32 %v252_v40, %v230_v15 }
   0xf   :  { %v138_v56 = vsub.f32 %v132_v44, %v137_v48  ;;  %v158_v57 = vsub.f32 %v152_v49, %v157_v50  ;;  %v177_v58 = vmul.f32 %v253_v45, %v231_v16  ;;  %v192_v59 = vmul.f32 %v257_v46, %v235_v21 }
  0x10   :  { %v116_v60 = vadd.f32 %v115_v36, %v94_v52  ;;  %v98_v61 = vadd.f32 %v97_v47, %v76_v53  ;;  %v197_v62 = vmul.f32 %v258_v51, %v236_v22  ;;  %v140_v63 = vmul.f32 %v242_v28, %v221_v9 }
  0x11   :  { %v159_v0 = vadd.f32 %v158_v57, %v138_v56  ;;  %v178_v1 = vsub.f32 %v172_v55, %v177_v58  ;;  %v141_v2 = vmul.f32 %v243_v33, %v36_v8  ;;  %v160_v3 = vmul.f32 %v247_v34, %v226_v13 }
  0x12   :  { %121 = vst [vmem:[%s354_s3] sm:$0xff] %v116_v60  ;;  %v120_v4 = vadd.f32 %v119_v54, %v98_v61  ;;  %v198_v5 = vsub.f32 %v192_v59, %v197_v62  ;;  %v161_v6 = vmul.f32 %v248_v35, %v225_v10  ;;  %v180_v7 = vmul.f32 %v252_v40, %v231_v16 }
  0x13   :  { %v179_v11 = vadd.f32 %v178_v1, %v159_v0  ;;  %v142_v12 = vadd.f32 %v141_v2, %v140_v63  ;;  %v181_v14 = vmul.f32 %v253_v45, %v230_v15  ;;  %v200_v17 = vmul.f32 %v257_v46, %v236_v22 }
  0x14   :  { %239 = vst [vmem:[%s354_s3 + $0x10] sm:$0xff] %v120_v4  ;;  %v162_v9 = vadd.f32 %v161_v6, %v160_v3  ;;  %v201_v18 = vmul.f32 %v258_v51, %v235_v21 }
  0x15   :  { %v199_v8 = vadd.f32 %v198_v5, %v179_v11  ;;  %v182_v13 = vadd.f32 %v181_v14, %v180_v7 }
  0x16   :  { %v163_v19 = vadd.f32 %v162_v9, %v142_v12  ;;  %v202_v20 = vadd.f32 %v201_v18, %v200_v17 }
  0x17   :  { %259 = vst [vmem:[%s354_s3 + $0x8] sm:$0xff] %v199_v8 }
  0x18   :  { %v183_v10 = vadd.f32 %v182_v13, %v163_v19 }
  0x1a   :  { %v203_v16 = vadd.f32 %v202_v20, %v183_v10 }
  0x1c   :  { %260 = vst [vmem:[%s354_s3 + $0x18] sm:$0xff] %v203_v16 }

</bundles_post_ra>
